<compile_context>
chip_gen: v5e
topology: v5e:2x2
jax: 0.10.0
libtpu: 0.0.40
codegen_flags: <defaults>
</compile_context>

<pallas_src>
import functools
import math

import jax
import jax.numpy as jnp
from jax.experimental import pallas as pl
from jax.experimental.pallas import tpu as pltpu


# ----------------------------------------------------------------------------
# Pallas kernels
# ----------------------------------------------------------------------------
def _exact_gelu(y):
    # PyTorch F.gelu default = exact erf-based gelu.
    return 0.5 * y * (1.0 + jax.lax.erf(y * (1.0 / math.sqrt(2.0))))


def _linear_kernel(x_ref, w_ref, b_ref, o_ref, *, act):
    # y = x @ W + b  (W stored as (in, out)), optional fused relu.
    y = jnp.dot(x_ref[...], w_ref[...], preferred_element_type=jnp.float32)
    y = y + b_ref[...]
    if act == "relu":
        y = jnp.maximum(y, 0.0)
    o_ref[...] = y.astype(o_ref.dtype)


def linear_pallas(x, w, b, act="none"):
    # Tiny node counts (N <= 12) -> whole-array blocks.
    # TODO(synk): add a row-tiled "parallel" grid (256-512 rows) for large graphs.
    n = x.shape[0]
    out_dim = w.shape[1]
    return pl.pallas_call(
        functools.partial(_linear_kernel, act=act),
        out_shape=jax.ShapeDtypeStruct((n, out_dim), jnp.float32),
    )(
        x.astype(jnp.float32),
        w.astype(jnp.float32),
        b.reshape(1, -1).astype(jnp.float32),
    )


def _hgt_dst_update_kernel(*refs, num_et, heads, head_dim):
    """Fused HGTConv update for one destination node type.

    refs layout:
      [qkv_dst, x_in, a_w, a_b, skip_gate(SMEM)]
      + per edge type: [qkv_src, adj, a_rel_t(scaled), m_rel]
      + [o_ref]
    """
    hidden = heads * head_dim
    qkv_d_ref, xin_ref, aw_ref, ab_ref, gate_ref = refs[:5]
    o_ref = refs[-1]
    et_refs = refs[5:-1]

    qkv_d = qkv_d_ref[...]            # (Nd, 3*hidden), layout [q | k | v]
    q_all = qkv_d[:, 0:hidden]        # (Nd, hidden)
    nd = q_all.shape[0]

    # Per-head aggregated messages (sum over incoming edge types), kept in
    # registers — no (H, N, D) relayout, no scratch.
    msgs = [jnp.zeros((nd, head_dim), jnp.float32) for _ in range(heads)]

    for e in range(num_et):
        qkv_s_ref, adj_ref, at_ref, m_ref = et_refs[4 * e:4 * e + 4]
        qkv_s = qkv_s_ref[...]                        # (Ns, 3*hidden)
        k_all = qkv_s[:, hidden:2 * hidden]           # (Ns, hidden)
        v_all = qkv_s[:, 2 * hidden:3 * hidden]       # (Ns, hidden)
        adj = adj_ref[...]                            # (Nd, Ns)
        # destinations with no in-edges of this type contribute zero
        has_edge = (jnp.sum(adj, axis=-1, keepdims=True) > 0.0).astype(jnp.float32)

        for h in range(heads):
            lo = h * head_dim
            hi = lo + head_dim
            q_h = q_all[:, lo:hi]                     # (Nd, D)
            k_h = k_all[:, lo:hi]                     # (Ns, D)
            v_h = v_all[:, lo:hi]                     # (Ns, D)

            # relation transform on q (pre-transposed + pre-scaled at init):
            # qa @ k^T == q @ (p/sqrt(D) * a)^T @ k^T == q @ (k @ a_scaled)^T
            qa = jnp.dot(q_h, at_ref[h], preferred_element_type=jnp.float32)
            # NT dot_general: contract last dims of both — no in-kernel .T
            s = jax.lax.dot_general(
                qa, k_h, (((1,), (1,)), ((), ())),
                preferred_element_type=jnp.float32)   # (Nd, Ns)

            s = jnp.where(adj > 0.0, s, jnp.float32(-1e30))
            m_max = jnp.max(s, axis=-1, keepdims=True)
            p = jnp.exp(s - m_max)                    # masked entries underflow to 0
            denom = jnp.sum(p, axis=-1, keepdims=True)  # >= 1 for rows with edges
            alpha = p / denom                         # (Nd, Ns)

            msg = jnp.dot(alpha, v_h, preferred_element_type=jnp.float32)   # (Nd, D)
            msg = jnp.dot(msg, m_ref[h], preferred_element_type=jnp.float32)
            msgs[h] = msgs[h] + has_edge * msg        # sum over edge types ('sum' group)

    # out = gate * (a_lin(gelu(agg))) + (1 - gate) * x_in
    # gelu(agg) @ W  ==  sum_h gelu(agg[:, hD:(h+1)D]) @ W[hD:(h+1)D, :]
    y = ab_ref[...]                                   # (1, hidden)
    for h in range(heads):
        lo = h * head_dim
        hi = lo + head_dim
        y = y + jnp.dot(_exact_gelu(msgs[h]), aw_ref[lo:hi, :],
                        preferred_element_type=jnp.float32)

    gate = gate_ref[0]                                # scalar from SMEM (sigmoid folded at init)
    o_ref[...] = (gate * y + (1.0 - gate) * xin_ref[...]).astype(o_ref.dtype)


def hgt_dst_update_pallas(qkv_dst, x_in, a_w, a_b, skip_gate, edge_inputs, heads, head_dim):
    """edge_inputs: list of (qkv_src, adj, a_rel_t_scaled, m_rel) per incoming edge type."""
    num_et = len(edge_inputs)
    n, hidden = x_in.shape
    vmem = pl.BlockSpec(memory_space=pltpu.MemorySpace.VMEM)
    smem = pl.BlockSpec(memory_space=pltpu.MemorySpace.SMEM)

    operands = [
        qkv_dst.astype(jnp.float32),
        x_in.astype(jnp.float32),
        a_w.astype(jnp.float32),
        a_b.reshape(1, -1).astype(jnp.float32),
        jnp.reshape(skip_gate, (1,)).astype(jnp.float32),
    ]
    in_specs = [vmem, vmem, vmem, vmem, smem]
    for (qkv_src, adj, a_t, m_r) in edge_inputs:
        operands += [qkv_src.astype(jnp.float32), adj.astype(jnp.float32),
                     a_t.astype(jnp.float32), m_r.astype(jnp.float32)]
        in_specs += [vmem, vmem, vmem, vmem]

    return pl.pallas_call(
        functools.partial(_hgt_dst_update_kernel,
                          num_et=num_et, heads=heads, head_dim=head_dim),
        out_shape=jax.ShapeDtypeStruct((n, hidden), jnp.float32),
        in_specs=in_specs,
        out_specs=pl.BlockSpec(memory_space=pltpu.MemorySpace.VMEM),
    )(*operands)


# ----------------------------------------------------------------------------
# Parameter init (deterministic, synthetic)
# ----------------------------------------------------------------------------
class KeyGen:
    def __init__(self, seed):
        self.key = jax.random.PRNGKey(seed)

    def __call__(self):
        self.key, sub = jax.random.split(self.key)
        return sub


def _init_linear(kg, in_dim, out_dim):
    return {
        "w": jax.random.normal(kg(), (in_dim, out_dim), jnp.float32) / jnp.sqrt(jnp.float32(in_dim)),
        "b": jax.random.normal(kg(), (out_dim,), jnp.float32) * 0.01,
    }


def init_params(kg, node_types, edge_types, in_dims, hidden, out_ch, heads, layers):
    D = hidden // heads
    params = {"lin_dict": {nt: _init_linear(kg, in_dims[nt], hidden) for nt in node_types}}
    convs = []
    for _ in range(layers):
        c = {"qkv": {}, "a_lin": {}, "skip_gate": {}, "a_rel_t": {}, "m_rel": {}}
        for nt in node_types:
            # Fused [q | k | v] projection: a single (hidden, 3*hidden) weight.
            c["qkv"][nt] = _init_linear(kg, hidden, 3 * hidden)
            c["a_lin"][nt] = _init_linear(kg, hidden, hidden)
            # skip parameter init = 1.0; sigmoid folded at init (forward-identical).
            c["skip_gate"][nt] = jax.nn.sigmoid(jnp.float32(1.0))
        for et in edge_types:
            ek = "__".join(et)
            a_rel = jax.random.normal(kg(), (heads, D, D), jnp.float32) / jnp.sqrt(jnp.float32(D))
            m_rel = jax.random.normal(kg(), (heads, D, D), jnp.float32) / jnp.sqrt(jnp.float32(D))
            p_rel = jnp.ones((heads,), jnp.float32)
            # Fold p_rel / sqrt(D) into a_rel and pre-transpose so the relation
            # transform is applied to q in-kernel: q @ a^T @ k^T == q @ (k @ a)^T.
            scale = (p_rel / jnp.sqrt(jnp.float32(D)))[:, None, None]
            c["a_rel_t"][ek] = jnp.transpose(a_rel, (0, 2, 1)) * scale
            c["m_rel"][ek] = m_rel
        convs.append(c)
    params["convs"] = convs
    params["lin"] = _init_linear(kg, hidden, out_ch)
    return params


# ----------------------------------------------------------------------------
# HGT forward
# ----------------------------------------------------------------------------
def hgt_conv_forward(p, x_dict, edge_index_dict, adj_dict, hidden, heads):
    D = hidden // heads
    # One fused QKV matmul per node type (x read from HBM once).
    qkv = {nt: linear_pallas(x, p["qkv"][nt]["w"], p["qkv"][nt]["b"])
           for nt, x in x_dict.items()}

    # Group incoming edge types by destination node type.
    incoming = {nt: [] for nt in x_dict}
    for et in edge_index_dict:
        src_t, _, dst_t = et
        ek = "__".join(et)
        incoming[dst_t].append((qkv[src_t], adj_dict[et], p["a_rel_t"][ek], p["m_rel"][ek]))

    new_x = {}
    for nt, x in x_dict.items():
        if not incoming[nt]:
            new_x[nt] = None  # TODO(synk): node types with no incoming edges stay None, as in PyG
            continue
        # One pallas_call per destination type: attention over all incoming
        # edge types + heads, sum aggregation, gelu, a_lin, skip blend.
        new_x[nt] = hgt_dst_update_pallas(
            qkv[nt], x, p["a_lin"][nt]["w"], p["a_lin"][nt]["b"],
            p["skip_gate"][nt], incoming[nt], heads, D)
    return new_x


def hgt_forward(params, x_dict, edge_index_dict, adj_dict, node_type, hidden, heads):
    # per-type input projection + relu_
    h_dict = {
        nt: linear_pallas(x, params["lin_dict"][nt]["w"], params["lin_dict"][nt]["b"], act="relu")
        for nt, x in x_dict.items()
    }
    for conv in params["convs"]:
        h_dict = hgt_conv_forward(conv, h_dict, edge_index_dict, adj_dict, hidden, heads)
    out = linear_pallas(h_dict[node_type], params["lin"]["w"], params["lin"]["b"], act="none")
    return out, h_dict


# ----------------------------------------------------------------------------
# Main
# ----------------------------------------------------------------------------
if __name__ == "__main__":
    node_types = ["paper", "author"]
    edge_types = [("author", "writes", "paper"), ("paper", "rev_writes", "author")]
    num_nodes = {"paper": 12, "author": 10}
    in_dims = {"paper": 6, "author": 5}
    hidden_channels, out_channels, num_heads, num_layers = 32, 8, 2, 2

    kg = KeyGen(0)  # PRNGKey(0)

    # node features
    x_dict = {
        nt: jax.random.normal(kg(), (num_nodes[nt], in_dims[nt]), jnp.float32)
        for nt in node_types
    }

    # deterministic, unique edges: author i writes papers i and (i+3) mod 12
    a_idx = jnp.arange(num_nodes["author"])
    writes = jnp.stack([
        jnp.concatenate([a_idx, a_idx]),                      # src (author)
        jnp.concatenate([a_idx % 12, (a_idx + 3) % 12]),      # dst (paper)
    ])
    rev = jnp.stack([writes[1], writes[0]])
    edge_index_dict = {edge_types[0]: writes, edge_types[1]: rev}

    # dense adjacency masks (dst, src) for each edge type
    adj_dict = {}
    for et, ei in edge_index_dict.items():
        src_t, _, dst_t = et
        adj = jnp.zeros((num_nodes[dst_t], num_nodes[src_t]), jnp.float32)
        adj = adj.at[ei[1], ei[0]].set(1.0)
        adj_dict[et] = adj

    params = init_params(kg, node_types, edge_types, in_dims,
                         hidden_channels, out_channels, num_heads, num_layers)

    out, h_dict = hgt_forward(params, x_dict, edge_index_dict, adj_dict,
                              "paper", hidden_channels, num_heads)

    jax.block_until_ready(out)
    for v in h_dict.values():
        if v is not None:
            jax.block_until_ready(v)

    assert out.shape == (num_nodes["paper"], out_channels)
    assert h_dict["paper"].shape == (num_nodes["paper"], hidden_channels)
    assert h_dict["author"].shape == (num_nodes["author"], hidden_channels)
    print("KERNEL_OK")
</pallas_src>

<mosaic_0001>
module attributes {stable_mosaic.version = 11 : i64} {
  func.func @_linear_kernel(%arg0: memref<12x6xf32, #tpu.memory_space<vmem>>, %arg1: memref<6x32xf32, #tpu.memory_space<vmem>>, %arg2: memref<1x32xf32, #tpu.memory_space<vmem>>, %arg3: memref<12x32xf32, #tpu.memory_space<vmem>>) attributes {dimension_semantics = [], scalar_prefetch = 0 : i64, scratch_operands = 0 : i64, tpu.core_type = #tpu.core_type<tc>} {
    %c0 = arith.constant 0 : index
    %c0_0 = arith.constant 0 : index
    %0 = vector.load %arg0[%c0, %c0_0] : memref<12x6xf32, #tpu.memory_space<vmem>>, vector<12x6xf32>
    %c0_1 = arith.constant 0 : index
    %c0_2 = arith.constant 0 : index
    %1 = vector.load %arg1[%c0_1, %c0_2] : memref<6x32xf32, #tpu.memory_space<vmem>>, vector<6x32xf32>
    %cst = arith.constant dense<0.000000e+00> : vector<12x32xf32>
    %2 = tpu.matmul %0, %1, %cst {dimension_numbers = #tpu.dot_dimension_numbers<[1], [0], [0], [1], [0, 0, 1, 1], [], []>} : vector<12x6xf32>, vector<6x32xf32>, vector<12x32xf32> -> vector<12x32xf32>
    %c0_3 = arith.constant 0 : index
    %c0_4 = arith.constant 0 : index
    %3 = vector.load %arg2[%c0_3, %c0_4] : memref<1x32xf32, #tpu.memory_space<vmem>>, vector<1x32xf32>
    %4 = vector.broadcast %3 : vector<1x32xf32> to vector<12x32xf32>
    %5 = arith.addf %2, %4 : vector<12x32xf32>
    %cst_5 = arith.constant 0.000000e+00 : f32
    %6 = vector.broadcast %cst_5 : f32 to vector<12x32xf32>
    %7 = arith.maximumf %5, %6 : vector<12x32xf32>
    %c0_6 = arith.constant 0 : index
    %c0_7 = arith.constant 0 : index
    %8 = vector.load %arg3[%c0_6, %c0_7] : memref<12x32xf32, #tpu.memory_space<vmem>>, vector<12x32xf32>
    tpu.vector_store %arg3[%c0_6, %c0_7], %7 {strides = array<i32>} : memref<12x32xf32, #tpu.memory_space<vmem>>, vector<12x32xf32>,
    return
  }
}

</mosaic_0001>

<bundles_post_ra>
// kernel: tpu_custom_call.1
= control target key start
LH: loop header
LB: loop body
LE: loop exit
PB: predicated region body
PF: predicated region fallthrough
CT: control target
= control target key end

     0   :  { %vm29_vm0 = vcmask 1045504   ;;  %vm22_vm1 = vcmask 48128   ;;  %s152_s0 = inlined_call_operand.vmem [shape: f32[12,6], index: 0, kind: input, shape index: {}]   ;;  %s153_s1 = inlined_call_operand.vmem [shape: f32[6,32], index: 1, kind: input, shape index: {}]   ;;  %s154_s2 = inlined_call_operand.vmem [shape: f32[1,32], index: 2, kind: input, shape index: {}]   ;;  %s155_s3 = inlined_call_operand.hbm [shape: f32[12,32], index: 3, kind: output, shape index: {}]  }
   0x1   :  { %v17_v0 = vld [vmem:[%s153_s1] sm:$0x3f]  ;;  %v16_v2 = vld [vmem:[%s152_s0 + $0x8] sm:$0xf] }
   0x2   :  { %v15_v1 = vld [vmem:[%s152_s0] sm:$0xff]  ;;  %80 = vmatpush.msk.msra.mxu0 %vm29_vm0, %v17_v0  ;;  %83 = vmatpush.msk.msra.mxu1 %vm29_vm0, %v17_v0 }
   0x3   :  { %81 = vmatmul.msk.f32.vlgmr.msra.gmra.mxu0 %vm22_vm1, %v15_v1  ;;  %82 = vmatmul.msk.f32.vlgmr.msra.gmra.mxu1 %vm22_vm1, %v16_v2 }
   0x4   :  { %8 = vsyncpa [#allocation3], 0  ;;  %v87_v3 = vld [vmem:[%s154_s2] ss:$0 sm:$0xff]  ;;  %s114_s1 = smov [#allocation2]   ;;  %s68_s23 = sshll.u32 %s155_s3, 4  ;;  %s69_s23 = int_to_ptr.hbm [resolvable:$true] %s68_s23 }
   0x5   :  { %s66_s20 = sshll.u32 %s114_s1, 4  ;;  %vm58_vm2 = vcmask 261120   ;;  %vm60_vm3 = vcmask 257024   ;;  %s115_s0 = smov 128   ;;  %s67_s20 = int_to_ptr.vmem [resolvable:$true] %s66_s20 }
   0x6   :  { %s116_s2 = smov 8  }
  0x80   :  { %v50_v4 = vpop.f32.mrf.mxu0  ;;  %v53_v5 = vpop.f32.mrf.mxu1 }
  0x81   :  { %v51_v6 = vadd.f32 %v87_v3, %v50_v4  ;;  %v54_v7 = vadd.f32 %v87_v3, %v53_v5 }
  0x83   :  { %v56_v8 = vmax.f32 %v51_v6, 0.0  ;;  %v57_v9 = vmax.f32 %v54_v7, 0.0 }
  0x85   :  { %59 = vst.msk [vmem:[#allocation2] sm:$0xff] %vm58_vm2, %v56_v8 }
  0x86   :  { %61 = vst.msk [vmem:[#allocation2 + $0x8] sm:$0xf] %vm60_vm3, %v57_v9 }
  0x87   :  { %74 = dma.vmem_to_hbm [thread:$0]  %s67_s20, 256, %s69_s23, [#allocation3], %s115_s0, %s115_s0, %s116_s2  }
  0x88   :  { %112 = dma.done.wait [#allocation3], 256  }
  0x89   :  { %113 = vsyncadd [#allocation3], 4294967040 }
  0x8a   :  { %79 = vsyncpa [#allocation3], 1 }

</bundles_post_ra>
